<compile_context>
chip_gen: v5e
topology: v5e:2x2
jax: 0.10.0
libtpu: 0.0.40
codegen_flags: <defaults>
</compile_context>

<pallas_src>
import functools

import jax
import jax.numpy as jnp
from jax import lax
from jax.experimental import pallas as pl
from jax.experimental.pallas import tpu as pltpu

NUM_HEADS = 2
NEG_INF = -1e30   # finite additive mask (avoids inf-inf NaNs in the online max)


def _pick_tile(n, target, granule):
    """Largest tile <= target that divides n and is a multiple of granule,
    else the full extent (always a legal block shape)."""
    if n <= target or n % granule != 0:
        return n
    t = (min(target, n) // granule) * granule
    while t > granule and n % t != 0:
        t -= granule
    return t


def gat_kernel(x_row_ref, x_nbr_ref, adj_ref,
               w_zf_ref, b_zf_ref, att_ref, b_gat_ref, w_gcn_ref,
               s_ref, dinv_ref,
               ai_scr, deg_scr, m_scr, l_scr, acc_scr):
    """Embedding + GATConv (online softmax over neighbor blocks) + ReLU, then
    the right-hand GCN factor  s = D^-1/2 (g @ w_gcn)  and dinv output."""
    f32 = jnp.float32
    k = pl.program_id(1)
    n_k = pl.num_programs(1)

    # ---- init once per row block ----
    @pl.when(k == 0)
    def _init():
        # Row-side attention coefficients; the row-block z is never needed
        # beyond this point, so only the tiny [TM, 2H] slab stays resident.
        z_i = (jnp.dot(x_row_ref[...].astype(f32), w_zf_ref[...],
                       preferred_element_type=f32) + b_zf_ref[...])
        ai_scr[...] = jnp.dot(z_i, att_ref[...], preferred_element_type=f32)
        deg_scr[...] = jnp.zeros_like(deg_scr)
        m_scr[...] = jnp.full_like(m_scr, NEG_INF)
        l_scr[...] = jnp.zeros_like(l_scr)
        acc_scr[...] = jnp.zeros_like(acc_scr)

    hd = acc_scr.shape[-1]

    # Recompute z for the neighbor block (F_in is tiny -> negligible MXU work,
    # avoids an extra pass / HBM round-trip for a materialized z).
    z_k = (jnp.dot(x_nbr_ref[...].astype(f32), w_zf_ref[...],
                   preferred_element_type=f32) + b_zf_ref[...])      # [TK, H*HD]
    # Batched attention coefficients: one [*, H*HD] x [H*HD, 2H] matmul
    # instead of four 1-lane matvecs.  Cols [0:H] = a_src, [H:2H] = a_dst.
    al_k = jnp.dot(z_k, att_ref[...], preferred_element_type=f32)    # [TK, 2H]
    al_i = ai_scr[...]                                               # [TM, 2H]

    adj = adj_ref[...].astype(f32)                                   # [TM, TK]
    deg_scr[...] += jnp.sum(adj, axis=-1, keepdims=True)
    edge = adj > 0.0                                                 # built once, both heads

    for h in range(NUM_HEADS):                                       # static unroll (H=2)
        a_dst = al_i[:, NUM_HEADS + h:NUM_HEADS + h + 1]             # [TM, 1]
        a_src = al_k[:, h:h + 1]                                     # [TK, 1]
        e = a_dst + a_src.T                                          # [TM, TK]
        e = jnp.where(e >= 0.0, e, 0.2 * e)                          # LeakyReLU(0.2)
        e = jnp.where(edge, e, NEG_INF)                              # mask non-edges

        m_prev = m_scr[h]                                            # [TM, 1]
        m_new = jnp.maximum(m_prev, jnp.max(e, axis=-1, keepdims=True))
        corr = jnp.exp(m_prev - m_new)
        p = jnp.exp(e - m_new)                                       # [TM, TK]
        l_scr[h] = corr * l_scr[h] + jnp.sum(p, axis=-1, keepdims=True)
        acc_scr[h] = corr * acc_scr[h] + jnp.dot(
            p, z_k[:, h * hd:(h + 1) * hd], preferred_element_type=f32)
        m_scr[h] = m_new

    # ---- finalize per row block ----
    @pl.when(k == n_k - 1)
    def _fin():
        b_gat = b_gat_ref[...]                                       # [1, H*HD]
        w_gcn = w_gcn_ref[...]                                       # [H*HD, HID]
        dinv = lax.rsqrt(deg_scr[...])                               # [TM, 1] (deg>0 via self-loops)
        out = jnp.zeros(s_ref.shape, f32)
        for h in range(NUM_HEADS):
            inv_l = pl.reciprocal(l_scr[h], approx=True)             # EUP, not a VALU divide
            g_h = jnp.maximum(acc_scr[h] * inv_l
                              + b_gat[:, h * hd:(h + 1) * hd], 0.0)
            # fold each head into its own w_gcn row slice -> no concat
            out = out + jnp.dot(g_h, w_gcn[h * hd:(h + 1) * hd, :],
                                preferred_element_type=f32)
        s_ref[...] = out * dinv
        dinv_ref[...] = dinv


def gcn_kernel(adj_ref, s_ref, dinv_ref, b_gcn_ref, out_ref, acc_scr):
    """out = relu(D^-1/2 A (D^-1/2 g W) + b); a_norm is never materialized.
    dinv comes from kernel 1 -> no per-block degree reduce here."""
    f32 = jnp.float32
    k = pl.program_id(1)
    n_k = pl.num_programs(1)

    @pl.when(k == 0)
    def _init():
        acc_scr[...] = jnp.zeros_like(acc_scr)

    acc_scr[...] += jnp.dot(adj_ref[...].astype(f32), s_ref[...].astype(f32),
                            preferred_element_type=f32)

    @pl.when(k == n_k - 1)
    def _fin():
        out_ref[...] = jnp.maximum(
            acc_scr[...] * dinv_ref[...] + b_gcn_ref[...], 0.0)


@functools.partial(jax.jit, static_argnames=("tm_target", "tk_target"))
def gat_encoder(x, adj, params, *, tm_target=256, tk_target=512):
    f32 = jnp.float32
    n, f_in = x.shape
    h_hd = params["w_gat"].shape[1]
    hd = h_hd // NUM_HEADS
    hid = params["w_gcn"].shape[1]

    # Fuse the embedding Linear into the GAT linear transform (exact: affine).
    w_zf = params["w_emb"].astype(f32) @ params["w_gat"].astype(f32)   # [F_in, H*HD]
    b_zf = params["b_emb"].astype(f32) @ params["w_gat"].astype(f32)   # [1,   H*HD]

    # Stack per-head attention vectors into one [H*HD, 2H] matrix.
    att = jnp.zeros((h_hd, 2 * NUM_HEADS), f32)
    for h in range(NUM_HEADS):
        att = att.at[h * hd:(h + 1) * hd, h].set(
            params["att_src"][:, h].astype(f32))
        att = att.at[h * hd:(h + 1) * hd, NUM_HEADS + h].set(
            params["att_dst"][:, h].astype(f32))

    tm = _pick_tile(n, tm_target, 8)      # row tile (sublane granule)
    tk = _pick_tile(n, tk_target, 128)    # neighbor tile (lane granule)
    grid = (n // tm, n // tk)

    def full_spec(a):
        zeros = (0,) * a.ndim
        return pl.BlockSpec(a.shape, lambda i, k, zeros=zeros: zeros)

    cp = pltpu.CompilerParams(
        dimension_semantics=("parallel", "arbitrary"),
        vmem_limit_bytes=32 * 1024 * 1024)

    x = x.astype(f32)
    adj = adj.astype(f32)
    b_gat = params["b_gat"].astype(f32)
    w_gcn = params["w_gcn"].astype(f32)
    b_gcn = params["b_gcn"].astype(f32)

    # ---- kernel 1: embedding + GAT + ReLU + D^-1/2 (g @ w_gcn), plus dinv ----
    s, dinv = pl.pallas_call(
        gat_kernel,
        out_shape=(jax.ShapeDtypeStruct((n, hid), f32),
                   jax.ShapeDtypeStruct((n, 1), f32)),
        grid_spec=pltpu.PrefetchScalarGridSpec(
            num_scalar_prefetch=0,
            grid=grid,
            in_specs=[
                pl.BlockSpec((tm, f_in), lambda i, k: (i, 0)),   # x (row nodes)
                pl.BlockSpec((tk, f_in), lambda i, k: (k, 0)),   # x (neighbor nodes)
                pl.BlockSpec((tm, tk), lambda i, k: (i, k)),     # adj block
                full_spec(w_zf), full_spec(b_zf), full_spec(att),
                full_spec(b_gat), full_spec(w_gcn),
            ],
            out_specs=[
                pl.BlockSpec((tm, hid), lambda i, k: (i, 0)),    # s
                pl.BlockSpec((tm, 1), lambda i, k: (i, 0)),      # dinv
            ],
            scratch_shapes=[
                pltpu.VMEM((tm, 2 * NUM_HEADS), f32),            # row-side attn coeffs
                pltpu.VMEM((tm, 1), f32),                        # degree
                pltpu.VMEM((NUM_HEADS, tm, 1), f32),             # running max
                pltpu.VMEM((NUM_HEADS, tm, 1), f32),             # running denom
                pltpu.VMEM((NUM_HEADS, tm, hd), f32),            # running numerator
            ]),
        compiler_params=cp,
    )(x, x, adj, w_zf, b_zf, att, b_gat, w_gcn)

    # ---- kernel 2: GCN aggregation + bias + ReLU ----
    out = pl.pallas_call(
        gcn_kernel,
        out_shape=jax.ShapeDtypeStruct((n, hid), f32),
        grid_spec=pltpu.PrefetchScalarGridSpec(
            num_scalar_prefetch=0,
            grid=grid,
            in_specs=[
                pl.BlockSpec((tm, tk), lambda i, k: (i, k)),     # adj block
                pl.BlockSpec((tk, hid), lambda i, k: (k, 0)),    # s (neighbors)
                pl.BlockSpec((tm, 1), lambda i, k: (i, 0)),      # dinv (rows)
                full_spec(b_gcn),
            ],
            out_specs=pl.BlockSpec((tm, hid), lambda i, k: (i, 0)),
            scratch_shapes=[pltpu.VMEM((tm, hid), f32)]),
        compiler_params=cp,
    )(adj, s, dinv, b_gcn)
    return out


def reference(x, adj, params):
    """Plain-JAX reference with identical (dense) semantics."""
    y = x @ params["w_emb"] + params["b_emb"]
    z = y @ params["w_gat"]
    hd = z.shape[1] // NUM_HEADS
    mask = adj > 0.0
    outs = []
    for h in range(NUM_HEADS):
        zh = z[:, h * hd:(h + 1) * hd]
        a_src = zh @ params["att_src"][:, h:h + 1]
        a_dst = zh @ params["att_dst"][:, h:h + 1]
        e = a_dst + a_src.T
        e = jnp.where(e >= 0.0, e, 0.2 * e)
        e = jnp.where(mask, e, NEG_INF)
        attn = jax.nn.softmax(e, axis=-1)
        outs.append(attn @ zh)
    g = jnp.maximum(jnp.concatenate(outs, axis=-1) + params["b_gat"], 0.0)
    deg = jnp.sum(adj, axis=-1, keepdims=True)
    dinv = 1.0 / jnp.sqrt(deg)
    a_norm = adj * dinv * dinv.T
    return jnp.maximum(a_norm @ (g @ params["w_gcn"]) + params["b_gcn"], 0.0)


if __name__ == "__main__":
    N, F_IN, EMB, HID = 8, 4, 8, 16

    key = jax.random.PRNGKey(0)
    ks = jax.random.split(key, 12)

    x = jax.random.normal(ks[0], (N, F_IN), jnp.float32)

    # small directed ring graph (both directions); edge_index = [src; dst]
    src = jnp.array([0, 1, 2, 3, 4, 5, 6, 7, 1, 2, 3, 4, 5, 6, 7, 0], jnp.int32)
    dst = jnp.array([1, 2, 3, 4, 5, 6, 7, 0, 0, 1, 2, 3, 4, 5, 6, 7], jnp.int32)
    edge_index = jnp.stack([src, dst])

    # glue: dense adjacency (dst receives from src) + self-loops (keeps deg > 0)
    adj = jnp.zeros((N, N), jnp.float32).at[edge_index[1], edge_index[0]].set(1.0)
    adj = jnp.maximum(adj, jnp.eye(N, dtype=jnp.float32))

    params = {
        "w_emb":   0.1 * jax.random.normal(ks[1], (F_IN, EMB), jnp.float32),
        "b_emb":   0.1 * jax.random.normal(ks[2], (1, EMB), jnp.float32),
        "w_gat":   0.1 * jax.random.normal(ks[3], (EMB, NUM_HEADS * HID), jnp.float32),
        "att_src": 0.1 * jax.random.normal(ks[4], (HID, NUM_HEADS), jnp.float32),
        "att_dst": 0.1 * jax.random.normal(ks[5], (HID, NUM_HEADS), jnp.float32),
        "b_gat":   0.1 * jax.random.normal(ks[6], (1, NUM_HEADS * HID), jnp.float32),
        "w_gcn":   0.1 * jax.random.normal(ks[7], (NUM_HEADS * HID, HID), jnp.float32),
        "b_gcn":   0.1 * jax.random.normal(ks[8], (1, HID), jnp.float32),
    }

    out = gat_encoder(x, adj, params)
    jax.block_until_ready(out)
    ref = reference(x, adj, params)
    assert out.shape == (N, HID)
    assert jnp.allclose(out, ref, atol=2e-3, rtol=2e-3), "mismatch vs JAX reference (small)"

    # larger random graph to exercise the tiled grid / online-softmax path
    N2 = 1024
    x2 = jax.random.normal(ks[9], (N2, F_IN), jnp.float32)
    adj2 = jax.random.bernoulli(ks[10], 0.01, (N2, N2)).astype(jnp.float32)
    adj2 = jnp.maximum(adj2, jnp.eye(N2, dtype=jnp.float32))   # self-loops -> deg > 0

    out2 = gat_encoder(x2, adj2, params)
    jax.block_until_ready(out2)
    ref2 = reference(x2, adj2, params)
    assert out2.shape == (N2, HID)
    assert jnp.allclose(out2, ref2, atol=2e-3, rtol=2e-3), "mismatch vs JAX reference (tiled)"

    print("KERNEL_OK")
</pallas_src>

<mosaic_0001>
module attributes {stable_mosaic.version = 11 : i64} {
  func.func @gat_kernel(%arg0: i32, %arg1: i32, %arg2: memref<8x4xf32, #tpu.memory_space<vmem>>, %arg3: memref<8x4xf32, #tpu.memory_space<vmem>>, %arg4: memref<8x8xf32, #tpu.memory_space<vmem>>, %arg5: memref<4x32xf32, #tpu.memory_space<vmem>>, %arg6: memref<1x32xf32, #tpu.memory_space<vmem>>, %arg7: memref<32x4xf32, #tpu.memory_space<vmem>>, %arg8: memref<1x32xf32, #tpu.memory_space<vmem>>, %arg9: memref<32x16xf32, #tpu.memory_space<vmem>>, %arg10: memref<8x16xf32, #tpu.memory_space<vmem>>, %arg11: memref<8x1xf32, #tpu.memory_space<vmem>>, %arg12: memref<8x4xf32, #tpu.memory_space<vmem>>, %arg13: memref<8x1xf32, #tpu.memory_space<vmem>>, %arg14: memref<2x8x1xf32, #tpu.memory_space<vmem>>, %arg15: memref<2x8x1xf32, #tpu.memory_space<vmem>>, %arg16: memref<2x8x16xf32, #tpu.memory_space<vmem>>) attributes {dimension_semantics = [#tpu.dimension_semantics<parallel>, #tpu.dimension_semantics<arbitrary>], iteration_bounds = array<i64: 1, 1>, scalar_prefetch = 0 : i64, scratch_operands = 5 : i64, tpu.core_type = #tpu.core_type<tc>, window_params = [{transform_indices = @transform_0, window_bounds = array<i64: 8, 4>}, {transform_indices = @transform_1, window_bounds = array<i64: 8, 4>}, {transform_indices = @transform_2, window_bounds = array<i64: 8, 8>}, {pipeline_mode = #tpu.pipeline_mode<synchronous>, transform_indices = @transform_3, window_bounds = array<i64: 4, 32>}, {pipeline_mode = #tpu.pipeline_mode<synchronous>, transform_indices = @transform_4, window_bounds = array<i64: 1, 32>}, {pipeline_mode = #tpu.pipeline_mode<synchronous>, transform_indices = @transform_5, window_bounds = array<i64: 32, 4>}, {pipeline_mode = #tpu.pipeline_mode<synchronous>, transform_indices = @transform_6, window_bounds = array<i64: 1, 32>}, {pipeline_mode = #tpu.pipeline_mode<synchronous>, transform_indices = @transform_7, window_bounds = array<i64: 32, 16>}, {transform_indices = @transform_8, window_bounds = array<i64: 8, 16>}, {transform_indices = @transform_9, window_bounds = array<i64: 8, 1>}]} {
    %c0_i32 = arith.constant 0 : i32
    %0 = arith.cmpi eq, %arg1, %c0_i32 : i32
    %1 = arith.extui %0 : i1 to i32
    %c0_i32_0 = arith.constant 0 : i32
    %2 = arith.cmpi ne, %1, %c0_i32_0 : i32
    scf.if %2 {
      %c0_68 = arith.constant 0 : index
      %c0_69 = arith.constant 0 : index
      %113 = vector.load %arg2[%c0_68, %c0_69] : memref<8x4xf32, #tpu.memory_space<vmem>>, vector<8x4xf32>
      %c0_70 = arith.constant 0 : index
      %c0_71 = arith.constant 0 : index
      %114 = vector.load %arg5[%c0_70, %c0_71] : memref<4x32xf32, #tpu.memory_space<vmem>>, vector<4x32xf32>
      %cst_72 = arith.constant dense<0.000000e+00> : vector<8x32xf32>
      %115 = tpu.matmul %113, %114, %cst_72 {dimension_numbers = #tpu.dot_dimension_numbers<[1], [0], [0], [1], [0, 0, 1, 1], [], []>} : vector<8x4xf32>, vector<4x32xf32>, vector<8x32xf32> -> vector<8x32xf32>
      %c0_73 = arith.constant 0 : index
      %c0_74 = arith.constant 0 : index
      %116 = vector.load %arg6[%c0_73, %c0_74] : memref<1x32xf32, #tpu.memory_space<vmem>>, vector<1x32xf32>
      %117 = vector.broadcast %116 : vector<1x32xf32> to vector<8x32xf32>
      %118 = arith.addf %115, %117 : vector<8x32xf32>
      %c0_75 = arith.constant 0 : index
      %c0_76 = arith.constant 0 : index
      %119 = vector.load %arg7[%c0_75, %c0_76] : memref<32x4xf32, #tpu.memory_space<vmem>>, vector<32x4xf32>
      %cst_77 = arith.constant dense<0.000000e+00> : vector<8x4xf32>
      %120 = tpu.matmul %118, %119, %cst_77 {dimension_numbers = #tpu.dot_dimension_numbers<[1], [0], [0], [1], [0, 0, 1, 1], [], []>} : vector<8x32xf32>, vector<32x4xf32>, vector<8x4xf32> -> vector<8x4xf32>
      %c0_78 = arith.constant 0 : index
      %c0_79 = arith.constant 0 : index
      %121 = vector.load %arg12[%c0_78, %c0_79] : memref<8x4xf32, #tpu.memory_space<vmem>>, vector<8x4xf32>
      tpu.vector_store %arg12[%c0_78, %c0_79], %120 {strides = array<i32>} : memref<8x4xf32, #tpu.memory_space<vmem>>, vector<8x4xf32>,
      %cst_80 = arith.constant 0.000000e+00 : f32
      %122 = vector.broadcast %cst_80 : f32 to vector<8x1xf32>
      %c0_81 = arith.constant 0 : index
      %c0_82 = arith.constant 0 : index
      %123 = vector.load %arg13[%c0_81, %c0_82] : memref<8x1xf32, #tpu.memory_space<vmem>>, vector<8x1xf32>
      tpu.vector_store %arg13[%c0_81, %c0_82], %122 {strides = array<i32>} : memref<8x1xf32, #tpu.memory_space<vmem>>, vector<8x1xf32>,
      %cst_83 = arith.constant -1.000000e+30 : f32
      %124 = vector.broadcast %cst_83 : f32 to vector<2x8x1xf32>
      %c0_84 = arith.constant 0 : index
      %c0_85 = arith.constant 0 : index
      %c0_86 = arith.constant 0 : index
      %125 = vector.load %arg14[%c0_84, %c0_85, %c0_86] : memref<2x8x1xf32, #tpu.memory_space<vmem>>, vector<2x8x1xf32>
      tpu.vector_store %arg14[%c0_84, %c0_85, %c0_86], %124 {strides = array<i32>} : memref<2x8x1xf32, #tpu.memory_space<vmem>>, vector<2x8x1xf32>,
      %cst_87 = arith.constant 0.000000e+00 : f32
      %126 = vector.broadcast %cst_87 : f32 to vector<2x8x1xf32>
      %c0_88 = arith.constant 0 : index
      %c0_89 = arith.constant 0 : index
      %c0_90 = arith.constant 0 : index
      %127 = vector.load %arg15[%c0_88, %c0_89, %c0_90] : memref<2x8x1xf32, #tpu.memory_space<vmem>>, vector<2x8x1xf32>
      tpu.vector_store %arg15[%c0_88, %c0_89, %c0_90], %126 {strides = array<i32>} : memref<2x8x1xf32, #tpu.memory_space<vmem>>, vector<2x8x1xf32>,
      %cst_91 = arith.constant 0.000000e+00 : f32
      %128 = vector.broadcast %cst_91 : f32 to vector<2x8x16xf32>
      %c0_92 = arith.constant 0 : index
      %c0_93 = arith.constant 0 : index
      %c0_94 = arith.constant 0 : index
      %129 = vector.load %arg16[%c0_92, %c0_93, %c0_94] : memref<2x8x16xf32, #tpu.memory_space<vmem>>, vector<2x8x16xf32>
      tpu.vector_store %arg16[%c0_92, %c0_93, %c0_94], %128 {strides = array<i32>} : memref<2x8x16xf32, #tpu.memory_space<vmem>>, vector<2x8x16xf32>,
    } else {
    }
    %c0 = arith.constant 0 : index
    %c0_1 = arith.constant 0 : index
    %3 = vector.load %arg3[%c0, %c0_1] : memref<8x4xf32, #tpu.memory_space<vmem>>, vector<8x4xf32>
    %c0_2 = arith.constant 0 : index
    %c0_3 = arith.constant 0 : index
    %4 = vector.load %arg5[%c0_2, %c0_3] : memref<4x32xf32, #tpu.memory_space<vmem>>, vector<4x32xf32>
    %cst = arith.constant dense<0.000000e+00> : vector<8x32xf32>
    %5 = tpu.matmul %3, %4, %cst {dimension_numbers = #tpu.dot_dimension_numbers<[1], [0], [0], [1], [0, 0, 1, 1], [], []>} : vector<8x4xf32>, vector<4x32xf32>, vector<8x32xf32> -> vector<8x32xf32>
    %c0_4 = arith.constant 0 : index
    %c0_5 = arith.constant 0 : index
    %6 = vector.load %arg6[%c0_4, %c0_5] : memref<1x32xf32, #tpu.memory_space<vmem>>, vector<1x32xf32>
    %7 = vector.broadcast %6 : vector<1x32xf32> to vector<8x32xf32>
    %8 = arith.addf %5, %7 : vector<8x32xf32>
    %c0_6 = arith.constant 0 : index
    %c0_7 = arith.constant 0 : index
    %9 = vector.load %arg7[%c0_6, %c0_7] : memref<32x4xf32, #tpu.memory_space<vmem>>, vector<32x4xf32>
    %cst_8 = arith.constant dense<0.000000e+00> : vector<8x4xf32>
    %10 = tpu.matmul %8, %9, %cst_8 {dimension_numbers = #tpu.dot_dimension_numbers<[1], [0], [0], [1], [0, 0, 1, 1], [], []>} : vector<8x32xf32>, vector<32x4xf32>, vector<8x4xf32> -> vector<8x4xf32>
    %c0_9 = arith.constant 0 : index
    %c0_10 = arith.constant 0 : index
    %11 = vector.load %arg12[%c0_9, %c0_10] : memref<8x4xf32, #tpu.memory_space<vmem>>, vector<8x4xf32>
    %c0_11 = arith.constant 0 : index
    %c0_12 = arith.constant 0 : index
    %12 = vector.load %arg4[%c0_11, %c0_12] : memref<8x8xf32, #tpu.memory_space<vmem>>, vector<8x8xf32>
    %c0_13 = arith.constant 0 : index
    %c0_14 = arith.constant 0 : index
    %13 = vector.load %arg13[%c0_13, %c0_14] : memref<8x1xf32, #tpu.memory_space<vmem>>, vector<8x1xf32>
    %cst_15 = arith.constant dense<0.000000e+00> : vector<8xf32>
    %14 = vector.multi_reduction <add>, %12, %cst_15 [1] : vector<8x8xf32> to vector<8xf32>
    %15 = vector.shape_cast %14 : vector<8xf32> to vector<8x1xf32>
    %16 = arith.addf %13, %15 : vector<8x1xf32>
    %c0_16 = arith.constant 0 : index
    %c0_17 = arith.constant 0 : index
    %17 = vector.load %arg13[%c0_16, %c0_17] : memref<8x1xf32, #tpu.memory_space<vmem>>, vector<8x1xf32>
    tpu.vector_store %arg13[%c0_16, %c0_17], %16 {strides = array<i32>} : memref<8x1xf32, #tpu.memory_space<vmem>>, vector<8x1xf32>,
    %cst_18 = arith.constant 0.000000e+00 : f32
    %18 = vector.broadcast %cst_18 : f32 to vector<8x8xf32>
    %19 = arith.cmpf ogt, %12, %18 : vector<8x8xf32>
    %20 = vector.extract_strided_slice %11 {offsets = [0, 2], sizes = [8, 1], strides = [1, 1]} : vector<8x4xf32> to vector<8x1xf32>
    %21 = vector.extract_strided_slice %10 {offsets = [0, 0], sizes = [8, 1], strides = [1, 1]} : vector<8x4xf32> to vector<8x1xf32>
    %22 = tpu.transpose %21, [1, 0] : vector<8x1xf32> -> vector<1x8xf32>
    %23 = vector.broadcast %20 : vector<8x1xf32> to vector<8x8xf32>
    %24 = vector.broadcast %22 : vector<1x8xf32> to vector<8x8xf32>
    %25 = arith.addf %23, %24 : vector<8x8xf32>
    %cst_19 = arith.constant 0.000000e+00 : f32
    %26 = vector.broadcast %cst_19 : f32 to vector<8x8xf32>
    %27 = arith.cmpf oge, %25, %26 : vector<8x8xf32>
    %cst_20 = arith.constant 2.000000e-01 : f32
    %28 = vector.broadcast %cst_20 : f32 to vector<8x8xf32>
    %29 = arith.mulf %28, %25 : vector<8x8xf32>
    %30 = arith.select %27, %25, %29 : vector<8x8xi1>, vector<8x8xf32>
    %cst_21 = arith.constant -1.000000e+30 : f32
    %31 = vector.broadcast %cst_21 : f32 to vector<8x8xf32>
    %32 = arith.select %19, %30, %31 : vector<8x8xi1>, vector<8x8xf32>
    %c0_22 = arith.constant 0 : index
    %c0_23 = arith.constant 0 : index
    %c0_24 = arith.constant 0 : index
    %33 = vector.load %arg14[%c0_22, %c0_23, %c0_24] : memref<2x8x1xf32, #tpu.memory_space<vmem>>, vector<1x8x1xf32>
    %34 = vector.shape_cast %33 : vector<1x8x1xf32> to vector<8x1xf32>
    %cst_25 = arith.constant dense<0xFF800000> : vector<8xf32>
    %35 = vector.multi_reduction <maximumf>, %32, %cst_25 [1] : vector<8x8xf32> to vector<8xf32>
    %36 = vector.shape_cast %35 : vector<8xf32> to vector<8x1xf32>
    %37 = arith.maximumf %34, %36 : vector<8x1xf32>
    %38 = arith.subf %34, %37 : vector<8x1xf32>
    %39 = math.exp %38 : vector<8x1xf32>
    %40 = vector.broadcast %37 : vector<8x1xf32> to vector<8x8xf32>
    %41 = arith.subf %32, %40 : vector<8x8xf32>
    %42 = math.exp %41 : vector<8x8xf32>
    %c0_26 = arith.constant 0 : index
    %c0_27 = arith.constant 0 : index
    %c0_28 = arith.constant 0 : index
    %43 = vector.load %arg15[%c0_26, %c0_27, %c0_28] : memref<2x8x1xf32, #tpu.memory_space<vmem>>, vector<1x8x1xf32>
    %44 = vector.shape_cast %43 : vector<1x8x1xf32> to vector<8x1xf32>
    %45 = arith.mulf %39, %44 : vector<8x1xf32>
    %cst_29 = arith.constant dense<0.000000e+00> : vector<8xf32>
    %46 = vector.multi_reduction <add>, %42, %cst_29 [1] : vector<8x8xf32> to vector<8xf32>
    %47 = vector.shape_cast %46 : vector<8xf32> to vector<8x1xf32>
    %48 = arith.addf %45, %47 : vector<8x1xf32>
    %c0_30 = arith.constant 0 : index
    %c0_31 = arith.constant 0 : index
    %c0_32 = arith.constant 0 : index
    %49 = vector.load %arg15[%c0_30, %c0_31, %c0_32] : memref<2x8x1xf32, #tpu.memory_space<vmem>>, vector<1x8x1xf32>
    %50 = vector.shape_cast %49 : vector<1x8x1xf32> to vector<8x1xf32>
    %51 = vector.shape_cast %48 : vector<8x1xf32> to vector<1x8x1xf32>
    tpu.vector_store %arg15[%c0_30, %c0_31, %c0_32], %51 {strides = array<i32>} : memref<2x8x1xf32, #tpu.memory_space<vmem>>, vector<1x8x1xf32>,
    %c0_33 = arith.constant 0 : index
    %c0_34 = arith.constant 0 : index
    %c0_35 = arith.constant 0 : index
    %52 = vector.load %arg16[%c0_33, %c0_34, %c0_35] : memref<2x8x16xf32, #tpu.memory_space<vmem>>, vector<1x8x16xf32>
    %53 = vector.shape_cast %52 : vector<1x8x16xf32> to vector<8x16xf32>
    %54 = vector.broadcast %39 : vector<8x1xf32> to vector<8x16xf32>
    %55 = arith.mulf %54, %53 : vector<8x16xf32>
    %56 = vector.extract_strided_slice %8 {offsets = [0, 0], sizes = [8, 16], strides = [1, 1]} : vector<8x32xf32> to vector<8x16xf32>
    %cst_36 = arith.constant dense<0.000000e+00> : vector<8x16xf32>
    %57 = tpu.matmul %42, %56, %cst_36 {dimension_numbers = #tpu.dot_dimension_numbers<[1], [0], [0], [1], [0, 0, 1, 1], [], []>} : vector<8x8xf32>, vector<8x16xf32>, vector<8x16xf32> -> vector<8x16xf32>
    %58 = arith.addf %55, %57 : vector<8x16xf32>
    %c0_37 = arith.constant 0 : index
    %c0_38 = arith.constant 0 : index
    %c0_39 = arith.constant 0 : index
    %59 = vector.load %arg16[%c0_37, %c0_38, %c0_39] : memref<2x8x16xf32, #tpu.memory_space<vmem>>, vector<1x8x16xf32>
    %60 = vector.shape_cast %59 : vector<1x8x16xf32> to vector<8x16xf32>
    %61 = vector.shape_cast %58 : vector<8x16xf32> to vector<1x8x16xf32>
    tpu.vector_store %arg16[%c0_37, %c0_38, %c0_39], %61 {strides = array<i32>} : memref<2x8x16xf32, #tpu.memory_space<vmem>>, vector<1x8x16xf32>,
    %c0_40 = arith.constant 0 : index
    %c0_41 = arith.constant 0 : index
    %c0_42 = arith.constant 0 : index
    %62 = vector.load %arg14[%c0_40, %c0_41, %c0_42] : memref<2x8x1xf32, #tpu.memory_space<vmem>>, vector<1x8x1xf32>
    %63 = vector.shape_cast %62 : vector<1x8x1xf32> to vector<8x1xf32>
    %64 = vector.shape_cast %37 : vector<8x1xf32> to vector<1x8x1xf32>
    tpu.vector_store %arg14[%c0_40, %c0_41, %c0_42], %64 {strides = array<i32>} : memref<2x8x1xf32, #tpu.memory_space<vmem>>, vector<1x8x1xf32>,
    %65 = vector.extract_strided_slice %11 {offsets = [0, 3], sizes = [8, 1], strides = [1, 1]} : vector<8x4xf32> to vector<8x1xf32>
    %66 = vector.extract_strided_slice %10 {offsets = [0, 1], sizes = [8, 1], strides = [1, 1]} : vector<8x4xf32> to vector<8x1xf32>
    %67 = tpu.transpose %66, [1, 0] : vector<8x1xf32> -> vector<1x8xf32>
    %68 = vector.broadcast %65 : vector<8x1xf32> to vector<8x8xf32>
    %69 = vector.broadcast %67 : vector<1x8xf32> to vector<8x8xf32>
    %70 = arith.addf %68, %69 : vector<8x8xf32>
    %cst_43 = arith.constant 0.000000e+00 : f32
    %71 = vector.broadcast %cst_43 : f32 to vector<8x8xf32>
    %72 = arith.cmpf oge, %70, %71 : vector<8x8xf32>
    %cst_44 = arith.constant 2.000000e-01 : f32
    %73 = vector.broadcast %cst_44 : f32 to vector<8x8xf32>
    %74 = arith.mulf %73, %70 : vector<8x8xf32>
    %75 = arith.select %72, %70, %74 : vector<8x8xi1>, vector<8x8xf32>
    %cst_45 = arith.constant -1.000000e+30 : f32
    %76 = vector.broadcast %cst_45 : f32 to vector<8x8xf32>
    %77 = arith.select %19, %75, %76 : vector<8x8xi1>, vector<8x8xf32>
    %c1 = arith.constant 1 : index
    %c0_46 = arith.constant 0 : index
    %c0_47 = arith.constant 0 : index
    %78 = vector.load %arg14[%c1, %c0_46, %c0_47] : memref<2x8x1xf32, #tpu.memory_space<vmem>>, vector<1x8x1xf32>
    %79 = vector.shape_cast %78 : vector<1x8x1xf32> to vector<8x1xf32>
    %cst_48 = arith.constant dense<0xFF800000> : vector<8xf32>
    %80 = vector.multi_reduction <maximumf>, %77, %cst_48 [1] : vector<8x8xf32> to vector<8xf32>
    %81 = vector.shape_cast %80 : vector<8xf32> to vector<8x1xf32>
    %82 = arith.maximumf %79, %81 : vector<8x1xf32>
    %83 = arith.subf %79, %82 : vector<8x1xf32>
    %84 = math.exp %83 : vector<8x1xf32>
    %85 = vector.broadcast %82 : vector<8x1xf32> to vector<8x8xf32>
    %86 = arith.subf %77, %85 : vector<8x8xf32>
    %87 = math.exp %86 : vector<8x8xf32>
    %c1_49 = arith.constant 1 : index
    %c0_50 = arith.constant 0 : index
    %c0_51 = arith.constant 0 : index
    %88 = vector.load %arg15[%c1_49, %c0_50, %c0_51] : memref<2x8x1xf32, #tpu.memory_space<vmem>>, vector<1x8x1xf32>
    %89 = vector.shape_cast %88 : vector<1x8x1xf32> to vector<8x1xf32>
    %90 = arith.mulf %84, %89 : vector<8x1xf32>
    %cst_52 = arith.constant dense<0.000000e+00> : vector<8xf32>
    %91 = vector.multi_reduction <add>, %87, %cst_52 [1] : vector<8x8xf32> to vector<8xf32>
    %92 = vector.shape_cast %91 : vector<8xf32> to vector<8x1xf32>
    %93 = arith.addf %90, %92 : vector<8x1xf32>
    %c1_53 = arith.constant 1 : index
    %c0_54 = arith.constant 0 : index
    %c0_55 = arith.constant 0 : index
    %94 = vector.load %arg15[%c1_53, %c0_54, %c0_55] : memref<2x8x1xf32, #tpu.memory_space<vmem>>, vector<1x8x1xf32>
    %95 = vector.shape_cast %94 : vector<1x8x1xf32> to vector<8x1xf32>
    %96 = vector.shape_cast %93 : vector<8x1xf32> to vector<1x8x1xf32>
    tpu.vector_store %arg15[%c1_53, %c0_54, %c0_55], %96 {strides = array<i32>} : memref<2x8x1xf32, #tpu.memory_space<vmem>>, vector<1x8x1xf32>,
    %c1_56 = arith.constant 1 : index
    %c0_57 = arith.constant 0 : index
    %c0_58 = arith.constant 0 : index
    %97 = vector.load %arg16[%c1_56, %c0_57, %c0_58] : memref<2x8x16xf32, #tpu.memory_space<vmem>>, vector<1x8x16xf32>
    %98 = vector.shape_cast %97 : vector<1x8x16xf32> to vector<8x16xf32>
    %99 = vector.broadcast %84 : vector<8x1xf32> to vector<8x16xf32>
    %100 = arith.mulf %99, %98 : vector<8x16xf32>
    %101 = vector.extract_strided_slice %8 {offsets = [0, 16], sizes = [8, 16], strides = [1, 1]} : vector<8x32xf32> to vector<8x16xf32>
    %cst_59 = arith.constant dense<0.000000e+00> : vector<8x16xf32>
    %102 = tpu.matmul %87, %101, %cst_59 {dimension_numbers = #tpu.dot_dimension_numbers<[1], [0], [0], [1], [0, 0, 1, 1], [], []>} : vector<8x8xf32>, vector<8x16xf32>, vector<8x16xf32> -> vector<8x16xf32>
    %103 = arith.addf %100, %102 : vector<8x16xf32>
    %c1_60 = arith.constant 1 : index
    %c0_61 = arith.constant 0 : index
    %c0_62 = arith.constant 0 : index
    %104 = vector.load %arg16[%c1_60, %c0_61, %c0_62] : memref<2x8x16xf32, #tpu.memory_space<vmem>>, vector<1x8x16xf32>
    %105 = vector.shape_cast %104 : vector<1x8x16xf32> to vector<8x16xf32>
    %106 = vector.shape_cast %103 : vector<8x16xf32> to vector<1x8x16xf32>
    tpu.vector_store %arg16[%c1_60, %c0_61, %c0_62], %106 {strides = array<i32>} : memref<2x8x16xf32, #tpu.memory_space<vmem>>, vector<1x8x16xf32>,
    %c1_63 = arith.constant 1 : index
    %c0_64 = arith.constant 0 : index
    %c0_65 = arith.constant 0 : index
    %107 = vector.load %arg14[%c1_63, %c0_64, %c0_65] : memref<2x8x1xf32, #tpu.memory_space<vmem>>, vector<1x8x1xf32>
    %108 = vector.shape_cast %107 : vector<1x8x1xf32> to vector<8x1xf32>
    %109 = vector.shape_cast %82 : vector<8x1xf32> to vector<1x8x1xf32>
    tpu.vector_store %arg14[%c1_63, %c0_64, %c0_65], %109 {strides = array<i32>} : memref<2x8x1xf32, #tpu.memory_space<vmem>>, vector<1x8x1xf32>,
    %c0_i32_66 = arith.constant 0 : i32
    %110 = arith.cmpi eq, %arg1, %c0_i32_66 : i32
    %111 = arith.extui %110 : i1 to i32
    %c0_i32_67 = arith.constant 0 : i32
    %112 = arith.cmpi ne, %111, %c0_i32_67 : i32
    scf.if %112 {
      %c0_68 = arith.constant 0 : index
      %c0_69 = arith.constant 0 : index
      %113 = vector.load %arg8[%c0_68, %c0_69] : memref<1x32xf32, #tpu.memory_space<vmem>>, vector<1x32xf32>
      %c0_70 = arith.constant 0 : index
      %c0_71 = arith.constant 0 : index
      %114 = vector.load %arg9[%c0_70, %c0_71] : memref<32x16xf32, #tpu.memory_space<vmem>>, vector<32x16xf32>
      %c0_72 = arith.constant 0 : index
      %c0_73 = arith.constant 0 : index
      %115 = vector.load %arg13[%c0_72, %c0_73] : memref<8x1xf32, #tpu.memory_space<vmem>>, vector<8x1xf32>
      %116 = math.rsqrt %115 : vector<8x1xf32>
      %cst_74 = arith.constant 0.000000e+00 : f32
      %117 = vector.broadcast %cst_74 : f32 to vector<8x16xf32>
      %c0_75 = arith.constant 0 : index
      %c0_76 = arith.constant 0 : index
      %c0_77 = arith.constant 0 : index
      %118 = vector.load %arg15[%c0_75, %c0_76, %c0_77] : memref<2x8x1xf32, #tpu.memory_space<vmem>>, vector<1x8x1xf32>
      %119 = vector.shape_cast %118 : vector<1x8x1xf32> to vector<8x1xf32>
      %120 = tpu.reciprocal %119 {approx = true} : vector<8x1xf32> -> vector<8x1xf32>
      %c0_78 = arith.constant 0 : index
      %c0_79 = arith.constant 0 : index
      %c0_80 = arith.constant 0 : index
      %121 = vector.load %arg16[%c0_78, %c0_79, %c0_80] : memref<2x8x16xf32, #tpu.memory_space<vmem>>, vector<1x8x16xf32>
      %122 = vector.shape_cast %121 : vector<1x8x16xf32> to vector<8x16xf32>
      %123 = vector.broadcast %120 : vector<8x1xf32> to vector<8x16xf32>
      %124 = arith.mulf %122, %123 : vector<8x16xf32>
      %125 = vector.extract_strided_slice %113 {offsets = [0, 0], sizes = [1, 16], strides = [1, 1]} : vector<1x32xf32> to vector<1x16xf32>
      %126 = vector.broadcast %125 : vector<1x16xf32> to vector<8x16xf32>
      %127 = arith.addf %124, %126 : vector<8x16xf32>
      %cst_81 = arith.constant 0.000000e+00 : f32
      %128 = vector.broadcast %cst_81 : f32 to vector<8x16xf32>
      %129 = arith.maximumf %127, %128 : vector<8x16xf32>
      %130 = vector.extract_strided_slice %114 {offsets = [0, 0], sizes = [16, 16], strides = [1, 1]} : vector<32x16xf32> to vector<16x16xf32>
      %cst_82 = arith.constant dense<0.000000e+00> : vector<8x16xf32>
      %131 = tpu.matmul %129, %130, %cst_82 {dimension_numbers = #tpu.dot_dimension_numbers<[1], [0], [0], [1], [0, 0, 1, 1], [], []>} : vector<8x16xf32>, vector<16x16xf32>, vector<8x16xf32> -> vector<8x16xf32>
      %132 = arith.addf %117, %131 : vector<8x16xf32>
      %c1_83 = arith.constant 1 : index
      %c0_84 = arith.constant 0 : index
      %c0_85 = arith.constant 0 : index
      %133 = vector.load %arg15[%c1_83, %c0_84, %c0_85] : memref<2x8x1xf32, #tpu.memory_space<vmem>>, vector<1x8x1xf32>
      %134 = vector.shape_cast %133 : vector<1x8x1xf32> to vector<8x1xf32>
      %135 = tpu.reciprocal %134 {approx = true} : vector<8x1xf32> -> vector<8x1xf32>
      %c1_86 = arith.constant 1 : index
      %c0_87 = arith.constant 0 : index
      %c0_88 = arith.constant 0 : index
      %136 = vector.load %arg16[%c1_86, %c0_87, %c0_88] : memref<2x8x16xf32, #tpu.memory_space<vmem>>, vector<1x8x16xf32>
      %137 = vector.shape_cast %136 : vector<1x8x16xf32> to vector<8x16xf32>
      %138 = vector.broadcast %135 : vector<8x1xf32> to vector<8x16xf32>
      %139 = arith.mulf %137, %138 : vector<8x16xf32>
      %140 = vector.extract_strided_slice %113 {offsets = [0, 16], sizes = [1, 16], strides = [1, 1]} : vector<1x32xf32> to vector<1x16xf32>
      %141 = vector.broadcast %140 : vector<1x16xf32> to vector<8x16xf32>
      %142 = arith.addf %139, %141 : vector<8x16xf32>
      %cst_89 = arith.constant 0.000000e+00 : f32
      %143 = vector.broadcast %cst_89 : f32 to vector<8x16xf32>
      %144 = arith.maximumf %142, %143 : vector<8x16xf32>
      %145 = vector.extract_strided_slice %114 {offsets = [16, 0], sizes = [16, 16], strides = [1, 1]} : vector<32x16xf32> to vector<16x16xf32>
      %cst_90 = arith.constant dense<0.000000e+00> : vector<8x16xf32>
      %146 = tpu.matmul %144, %145, %cst_90 {dimension_numbers = #tpu.dot_dimension_numbers<[1], [0], [0], [1], [0, 0, 1, 1], [], []>} : vector<8x16xf32>, vector<16x16xf32>, vector<8x16xf32> -> vector<8x16xf32>
      %147 = arith.addf %132, %146 : vector<8x16xf32>
      %148 = vector.broadcast %116 : vector<8x1xf32> to vector<8x16xf32>
      %149 = arith.mulf %147, %148 : vector<8x16xf32>
      %c0_91 = arith.constant 0 : index
      %c0_92 = arith.constant 0 : index
      %150 = vector.load %arg10[%c0_91, %c0_92] : memref<8x16xf32, #tpu.memory_space<vmem>>, vector<8x16xf32>
      tpu.vector_store %arg10[%c0_91, %c0_92], %149 {strides = array<i32>} : memref<8x16xf32, #tpu.memory_space<vmem>>, vector<8x16xf32>,
      %c0_93 = arith.constant 0 : index
      %c0_94 = arith.constant 0 : index
      %151 = vector.load %arg11[%c0_93, %c0_94] : memref<8x1xf32, #tpu.memory_space<vmem>>, vector<8x1xf32>
      tpu.vector_store %arg11[%c0_93, %c0_94], %116 {strides = array<i32>} : memref<8x1xf32, #tpu.memory_space<vmem>>, vector<8x1xf32>,
    } else {
    }
    return
  }
  func.func @transform_0(%arg0: i32, %arg1: i32) -> (i32, i32) {
    %c0_i32 = arith.constant 0 : i32
    %c0_i32_0 = arith.constant 0 : i32
    return %arg0, %c0_i32 : i32, i32
  }
  func.func @transform_1(%arg0: i32, %arg1: i32) -> (i32, i32) {
    %c0_i32 = arith.constant 0 : i32
    %c0_i32_0 = arith.constant 0 : i32
    return %arg1, %c0_i32 : i32, i32
  }
  func.func @transform_2(%arg0: i32, %arg1: i32) -> (i32, i32) {
    %c0_i32 = arith.constant 0 : i32
    return %arg0, %arg1 : i32, i32
  }
  func.func @transform_3(%arg0: i32, %arg1: i32) -> (i32, i32) {
    %c0_i32 = arith.constant 0 : i32
    %c0_i32_0 = arith.constant 0 : i32
    %c0_i32_1 = arith.constant 0 : i32
    return %c0_i32, %c0_i32_0 : i32, i32
  }
  func.func @transform_4(%arg0: i32, %arg1: i32) -> (i32, i32) {
    %c0_i32 = arith.constant 0 : i32
    %c0_i32_0 = arith.constant 0 : i32
    %c0_i32_1 = arith.constant 0 : i32
    return %c0_i32, %c0_i32_0 : i32, i32
  }
  func.func @transform_5(%arg0: i32, %arg1: i32) -> (i32, i32) {
    %c0_i32 = arith.constant 0 : i32
    %c0_i32_0 = arith.constant 0 : i32
    %c0_i32_1 = arith.constant 0 : i32
    return %c0_i32, %c0_i32_0 : i32, i32
  }
  func.func @transform_6(%arg0: i32, %arg1: i32) -> (i32, i32) {
    %c0_i32 = arith.constant 0 : i32
    %c0_i32_0 = arith.constant 0 : i32
    %c0_i32_1 = arith.constant 0 : i32
    return %c0_i32, %c0_i32_0 : i32, i32
  }
  func.func @transform_7(%arg0: i32, %arg1: i32) -> (i32, i32) {
    %c0_i32 = arith.constant 0 : i32
    %c0_i32_0 = arith.constant 0 : i32
    %c0_i32_1 = arith.constant 0 : i32
    return %c0_i32, %c0_i32_0 : i32, i32
  }
  func.func @transform_8(%arg0: i32, %arg1: i32) -> (i32, i32) {
    %c0_i32 = arith.constant 0 : i32
    %c0_i32_0 = arith.constant 0 : i32
    return %arg0, %c0_i32 : i32, i32
  }
  func.func @transform_9(%arg0: i32, %arg1: i32) -> (i32, i32) {
    %c0_i32 = arith.constant 0 : i32
    %c0_i32_0 = arith.constant 0 : i32
    return %arg0, %c0_i32 : i32, i32
  }
}

module attributes {stable_mosaic.version = 11 : i64} {
  func.func @gcn_kernel(%arg0: i32, %arg1: i32, %arg2: memref<8x8xf32, #tpu.memory_space<vmem>>, %arg3: memref<8x16xf32, #tpu.memory_space<vmem>>, %arg4: memref<8x1xf32, #tpu.memory_space<vmem>>, %arg5: memref<1x16xf32, #tpu.memory_space<vmem>>, %arg6: memref<8x16xf32, #tpu.memory_space<vmem>>, %arg7: memref<8x16xf32, #tpu.memory_space<vmem>>) attributes {dimension_semantics = [#tpu.dimension_semantics<parallel>, #tpu.dimension_semantics<arbitrary>], iteration_bounds = array<i64: 1, 1>, scalar_prefetch = 0 : i64, scratch_operands = 1 : i64, tpu.core_type = #tpu.core_type<tc>, window_params = [{transform_indices = @transform_0, window_bounds = array<i64: 8, 8>}, {transform_indices = @transform_1, window_bounds = array<i64: 8, 16>}, {transform_indices = @transform_2, window_bounds = array<i64: 8, 1>}, {pipeline_mode = #tpu.pipeline_mode<synchronous>, transform_indices = @transform_3, window_bounds = array<i64: 1, 16>}, {transform_indices = @transform_4, window_bounds = array<i64: 8, 16>}]} {
    %c0_i32 = arith.constant 0 : i32
    %0 = arith.cmpi eq, %arg1, %c0_i32 : i32
    %1 = arith.extui %0 : i1 to i32
    %c0_i32_0 = arith.constant 0 : i32
    %2 = arith.cmpi ne, %1, %c0_i32_0 : i32
    scf.if %2 {
      %cst_10 = arith.constant 0.000000e+00 : f32
      %12 = vector.broadcast %cst_10 : f32 to vector<8x16xf32>
      %c0_11 = arith.constant 0 : index
      %c0_12 = arith.constant 0 : index
      %13 = vector.load %arg7[%c0_11, %c0_12] : memref<8x16xf32, #tpu.memory_space<vmem>>, vector<8x16xf32>
      tpu.vector_store %arg7[%c0_11, %c0_12], %12 {strides = array<i32>} : memref<8x16xf32, #tpu.memory_space<vmem>>, vector<8x16xf32>,
    } else {
    }
    %c0 = arith.constant 0 : index
    %c0_1 = arith.constant 0 : index
    %3 = vector.load %arg7[%c0, %c0_1] : memref<8x16xf32, #tpu.memory_space<vmem>>, vector<8x16xf32>
    %c0_2 = arith.constant 0 : index
    %c0_3 = arith.constant 0 : index
    %4 = vector.load %arg2[%c0_2, %c0_3] : memref<8x8xf32, #tpu.memory_space<vmem>>, vector<8x8xf32>
    %c0_4 = arith.constant 0 : index
    %c0_5 = arith.constant 0 : index
    %5 = vector.load %arg3[%c0_4, %c0_5] : memref<8x16xf32, #tpu.memory_space<vmem>>, vector<8x16xf32>
    %cst = arith.constant dense<0.000000e+00> : vector<8x16xf32>
    %6 = tpu.matmul %4, %5, %cst {dimension_numbers = #tpu.dot_dimension_numbers<[1], [0], [0], [1], [0, 0, 1, 1], [], []>} : vector<8x8xf32>, vector<8x16xf32>, vector<8x16xf32> -> vector<8x16xf32>
    %7 = arith.addf %3, %6 : vector<8x16xf32>
    %c0_6 = arith.constant 0 : index
    %c0_7 = arith.constant 0 : index
    %8 = vector.load %arg7[%c0_6, %c0_7] : memref<8x16xf32, #tpu.memory_space<vmem>>, vector<8x16xf32>
    tpu.vector_store %arg7[%c0_6, %c0_7], %7 {strides = array<i32>} : memref<8x16xf32, #tpu.memory_space<vmem>>, vector<8x16xf32>,
    %c0_i32_8 = arith.constant 0 : i32
    %9 = arith.cmpi eq, %arg1, %c0_i32_8 : i32
    %10 = arith.extui %9 : i1 to i32
    %c0_i32_9 = arith.constant 0 : i32
    %11 = arith.cmpi ne, %10, %c0_i32_9 : i32
    scf.if %11 {
      %c0_10 = arith.constant 0 : index
      %c0_11 = arith.constant 0 : index
      %12 = vector.load %arg7[%c0_10, %c0_11] : memref<8x16xf32, #tpu.memory_space<vmem>>, vector<8x16xf32>
      %c0_12 = arith.constant 0 : index
      %c0_13 = arith.constant 0 : index
      %13 = vector.load %arg4[%c0_12, %c0_13] : memref<8x1xf32, #tpu.memory_space<vmem>>, vector<8x1xf32>
      %14 = vector.broadcast %13 : vector<8x1xf32> to vector<8x16xf32>
      %15 = arith.mulf %12, %14 : vector<8x16xf32>
      %c0_14 = arith.constant 0 : index
      %c0_15 = arith.constant 0 : index
      %16 = vector.load %arg5[%c0_14, %c0_15] : memref<1x16xf32, #tpu.memory_space<vmem>>, vector<1x16xf32>
      %17 = vector.broadcast %16 : vector<1x16xf32> to vector<8x16xf32>
      %18 = arith.addf %15, %17 : vector<8x16xf32>
      %cst_16 = arith.constant 0.000000e+00 : f32
      %19 = vector.broadcast %cst_16 : f32 to vector<8x16xf32>
      %20 = arith.maximumf %18, %19 : vector<8x16xf32>
      %c0_17 = arith.constant 0 : index
      %c0_18 = arith.constant 0 : index
      %21 = vector.load %arg6[%c0_17, %c0_18] : memref<8x16xf32, #tpu.memory_space<vmem>>, vector<8x16xf32>
      tpu.vector_store %arg6[%c0_17, %c0_18], %20 {strides = array<i32>} : memref<8x16xf32, #tpu.memory_space<vmem>>, vector<8x16xf32>,
    } else {
    }
    return
  }
  func.func @transform_0(%arg0: i32, %arg1: i32) -> (i32, i32) {
    %c0_i32 = arith.constant 0 : i32
    return %arg0, %arg1 : i32, i32
  }
  func.func @transform_1(%arg0: i32, %arg1: i32) -> (i32, i32) {
    %c0_i32 = arith.constant 0 : i32
    %c0_i32_0 = arith.constant 0 : i32
    return %arg1, %c0_i32 : i32, i32
  }
  func.func @transform_2(%arg0: i32, %arg1: i32) -> (i32, i32) {
    %c0_i32 = arith.constant 0 : i32
    %c0_i32_0 = arith.constant 0 : i32
    return %arg0, %c0_i32 : i32, i32
  }
  func.func @transform_3(%arg0: i32, %arg1: i32) -> (i32, i32) {
    %c0_i32 = arith.constant 0 : i32
    %c0_i32_0 = arith.constant 0 : i32
    %c0_i32_1 = arith.constant 0 : i32
    return %c0_i32, %c0_i32_0 : i32, i32
  }
  func.func @transform_4(%arg0: i32, %arg1: i32) -> (i32, i32) {
    %c0_i32 = arith.constant 0 : i32
    %c0_i32_0 = arith.constant 0 : i32
    return %arg0, %c0_i32 : i32, i32
  }
}

</mosaic_0001>

<bundles_post_ra>
// kernel: gat_encoder.3
= control target key start
LH: loop header
LB: loop body
LE: loop exit
PB: predicated region body
PF: predicated region fallthrough
CT: control target
= control target key end

     0   :  { %vm27_vm0 = vcmask 64512   ;;  %vm22_vm1 = vcmask 130048   ;;  %v120_v3 = vmov 0   ;;  %s166_s0 = inlined_call_operand.vmem [shape: f32[8,8], index: 0, kind: input, shape index: {}]   ;;  %s167_s1 = inlined_call_operand.vmem [shape: f32[8,16], index: 1, kind: input, shape index: {}]   ;;  %s168_s2 = inlined_call_operand.vmem [shape: f32[8,1], index: 2, kind: input, shape index: {}]   ;;  %s169_s3 = inlined_call_operand.vmem [shape: f32[1,16], index: 3, kind: input, shape index: {}]   ;;  %s170_s4 = inlined_call_operand.hbm [shape: f32[8,16], index: 4, kind: output, shape index: {}]  }
   0x1   :  { %v26_v0 = vld [vmem:[%s167_s1] sm:$0xff]  ;;  %92 = vset.pattern.permute.xlu0 %v120_v3 }
   0x2   :  { %v25_v1 = vld [vmem:[%s166_s0] sm:$0xff]  ;;  %46 = vmatpush.msra.mxu0 %v26_v0 }
   0x3   :  { %v58_v2 = vld [vmem:[%s168_s2] sm:$0xff] }
   0x4   :  { %9 = vsyncpa [#allocation4], 0  ;;  %88 = vmatmul.msk.f32.vlgmr.msra.gmra.mxu0 %vm27_vm0, %v25_v1  ;;  %61 = vperm.xlu0 %92, %v58_v2   ;;  %v121_v4 = vmov 0.0   ;;  %v93_v9 = vld [vmem:[%s169_s3] ss:$0 sm:$0xff]  ;;  %s122_s2 = smov [#allocation3]  }
   0x5   :  { %23 = vst.msk [vmem:[#allocation2] sm:$0xff] %vm22_vm1, %v121_v4  ;;  %s77_s21 = sshll.u32 %s122_s2, 4  ;;  %s79_s24 = sshll.u32 %s170_s4, 4  ;;  %s78_s21 = int_to_ptr.vmem [resolvable:$true] %s77_s21  ;;  %s80_s24 = int_to_ptr.hbm [resolvable:$true] %s79_s24 }
   0xc   :  { %v24_v5 = vld [vmem:[#allocation2] sm:$0xff] }
  0x76   :  { %v62_v8 = vpop.permute.xlu0 %61 }
  0x81   :  { %v48_v6 = vpop.f32.mrf.mxu0 }
  0x82   :  { %v51_v7 = vadd.f32 %v48_v6, %v24_v5 }
  0x84   :  { %53 = vst.msk [vmem:[#allocation2] sm:$0xff] %vm22_vm1, %v51_v7 }
  0x8b   :  { %v57_v10 = vld [vmem:[#allocation2] sm:$0xff] }
  0x8c   :  { %v64_v11 = vmul.f32 %v62_v8, %v57_v10 }
  0x8e   :  { %v69_v12 = vadd.f32 %v93_v9, %v64_v11 }
  0x90   :  { %v70_v13 = vmax.f32 %v69_v12, 0.0 }
  0x92   :  { %71 = vst.msk [vmem:[#allocation3] sm:$0xff] %vm22_vm1, %v70_v13 }
  0x93   :  { %82 = dma.vmem_to_hbm [thread:$0]  %s78_s21, 128, %s80_s24, [#allocation4]  }
  0x94   :  { %118 = dma.done.wait [#allocation4], 128  }
  0x95   :  { %119 = vsyncadd [#allocation4], 4294967168 }
  0x96   :  { %87 = vsyncpa [#allocation4], 1 }

// kernel: gat_encoder.2
= control target key start
LH: loop header
LB: loop body
LE: loop exit
PB: predicated region body
PF: predicated region fallthrough
CT: control target
= control target key end

     0   :  { %vm45_vm0 = vcmask 1043456   ;;  %vm41_vm1 = vcmask 31744   ;;  %vm73_vm2 = vcmask 261120   ;;  %v536_v14 = vmov 3   ;;  %s690_s3 = inlined_call_operand.vmem [shape: f32[4,32], index: 3, kind: input, shape index: {}]   ;;  %s691_s0 = inlined_call_operand.vmem [shape: f32[8,4], index: 0, kind: input, shape index: {}, may-alias: {0,1}]   ;;  %s692_s1 = inlined_call_operand.vmem [shape: f32[8,4], index: 1, kind: input, shape index: {}, may-alias: {0,1}]   ;;  %s693_s5 = inlined_call_operand.vmem [shape: f32[32,4], index: 5, kind: input, shape index: {}]   ;;  %s694_s4 = inlined_call_operand.vmem [shape: f32[1,32], index: 4, kind: input, shape index: {}]   ;;  %s695_s2 = inlined_call_operand.vmem [shape: f32[8,8], index: 2, kind: input, shape index: {}]   ;;  %s696_s6 = inlined_call_operand.vmem [shape: f32[1,32], index: 6, kind: input, shape index: {}]   ;;  %s697_s7 = inlined_call_operand.vmem [shape: f32[32,16], index: 7, kind: input, shape index: {}]   ;;  %s698_s9 = inlined_call_operand.vmem [shape: f32[8,1], index: 9, kind: output, shape index: {1}]   ;;  %s699_s8 = inlined_call_operand.vmem [shape: f32[8,16], index: 8, kind: output, shape index: {0}]  }
   0x1   :  { %v36_v0 = vld [vmem:[%s690_s3] sm:$0xf]  ;;  %v72_v4 = vld [vmem:[%s693_s5 + $0x18] sm:$0xff]  ;;  %v71_v5 = vld [vmem:[%s693_s5 + $0x10] sm:$0xff]  ;;  %515 = vset.pattern.permute.xlu1 %v536_v14  ;;  %v537_v15 = vmov 2   ;;  %vm172_vm5 = vcmask 64512  }
   0x2   :  { %v108_v1 = vld [vmem:[%s690_s3] sm:$0xf]  ;;  %497 = vmatpush.msk.msra.mxu0 %vm45_vm0, %v36_v0  ;;  %89 = vmatpush.msra.mxu1 %v72_v4  ;;  %v70_v6 = vld [vmem:[%s693_s5 + $0x8] sm:$0xff]  ;;  %vm98_vm6 = vcmask 7168   ;;  %v539_v30 = vmov -1e+30  }
   0x3   :  { %v35_v2 = vld [vmem:[%s691_s0] sm:$0xff]  ;;  %500 = vmatpush.msk.msra.mxu2 %vm45_vm0, %v108_v1  ;;  %161 = vmatpush.msra.mxu3 %v72_v4  ;;  %100 = vst.msk [vmem:[#allocation4] sm:$0xff] %vm98_vm6, %v539_v30  ;;  %v540_v38 = vmov 0   ;;  %v541_v39 = vmov 0.0   ;;  %vm104_vm8 = vcmask 130048  }
   0x4   :  { %v107_v3 = vld [vmem:[%s692_s1] sm:$0xff]  ;;  %498 = vmatmul.msk.f32.vlgmr.msra.gmra.mxu0 %vm41_vm1, %v35_v2  ;;  %90 = vmatpush.msra.mxu1 %v71_v5  ;;  %101 = vst.msk [vmem:[#allocation4 + $0x8] sm:$0xff] %vm98_vm6, %v539_v30  ;;  %v395_v30 = vld [vmem:[%s697_s7 + $0x18] sm:$0xff] }
   0x5   :  { %501 = vmatmul.msk.f32.vlgmr.msra.gmra.mxu2 %vm41_vm1, %v107_v3  ;;  %162 = vmatpush.msra.mxu3 %v71_v5  ;;  %v69_v7 = vld [vmem:[%s693_s5] sm:$0xff]  ;;  %s538_s5 = smov 127   ;;  %99 = vst.msk [vmem:[#allocation3] sm:$0xff] %vm98_vm6, %v541_v39 }
   0x6   :  { %91 = vmatpush.msra.mxu1 %v70_v6  ;;  %v519_v8 = vld [vmem:[%s694_s4] ss:$0 sm:$0xff]  ;;  %514 = vset.pattern.permute.xlu0 %v537_v15  ;;  %102 = vst.msk [vmem:[#allocation5] sm:$0xff] %vm98_vm6, %v541_v39 }
   0x7   :  { %163 = vmatpush.msra.mxu3 %v70_v6  ;;  %v520_v11 = vld [vmem:[%s694_s4] ss:$0 sm:$0xff]  ;;  %103 = vst.msk [vmem:[#allocation5 + $0x8] sm:$0xff] %vm98_vm6, %v541_v39 }
   0x8   :  { %92 = vmatpush.msra.mxu1 %v69_v7  ;;  %v633_v25 = vld [vmem:[%s695_s2] sm:$0xff]  ;;  %s542_s2 = smov 112   ;;  %106 = vst.msk [vmem:[#allocation6 + $0x8] sm:$0xff] %vm104_vm8, %v541_v39 }
   0x9   :  { %164 = vmatpush.msra.mxu3 %v69_v7  ;;  %vm179_vm4 = vcmp.gt.f32.partialorder %v633_v25, 0.0  ;;  %105 = vst.msk [vmem:[#allocation6] sm:$0xff] %vm104_vm8, %v541_v39  ;;  %v521_v5 = vld [vmem:[%s696_s6] ss:$0 sm:$0xff] }
   0xa   :  { %v223_v40 = vld [vmem:[#allocation4] sm:$0xff]  ;;  %452 = vmatpush.msrb.mxu1 %v395_v30 }
   0xb   :  { %v327_v44 = vld [vmem:[#allocation4 + $0x8] sm:$0xff] }
   0xd   :  { %v239_v63 = vld [vmem:[#allocation5] sm:$0xff] }
   0xe   :  { %v344_v6 = vld [vmem:[#allocation5 + $0x8] sm:$0xff] }
  0x81   :  { %v66_v9 = vpop.f32.mrf.mxu0 }
  0x82   :  { %v67_v10 = vadd.f32 %v519_v8, %v66_v9 }
  0x84   :  { %499 = vmatmul.msk.f32.vlgmr.msra.gmra.mxu1 %vm73_vm2, %v67_v10  ;;  %v246_v10 = vld [vmem:[#allocation6] sm:$0xff] }
  0x88   :  { %v138_v12 = vpop.f32.mrf.mxu2 }
  0x89   :  { %v625_v13 = vadd.f32 %v520_v11, %v138_v12  ;;  %v173_v11 = vsel %vm172_vm5, %v633_v25, 0.0 }
  0x8b   :  { %502 = vmatmul.msk.f32.vlgmr.msra.gmra.mxu3 %vm73_vm2, %v625_v13  ;;  %271 = vmatpush.msrb.mxu0 %v625_v13 }
 0x101   :  { %v94_v16 = vpop.f32.mrf.mxu1 }
 0x102   :  { %97 = vst.msk [vmem:[#allocation2] sm:$0xff] %vm41_vm1, %v94_v16  ;;  %v352_v16 = vld [vmem:[#allocation6 + $0x8] sm:$0xff] }
 0x109   :  { %v169_v17 = vld [vmem:[#allocation2] sm:$0xff] }
 0x10a   :  { %317 = vperm.xlu1 %515, %v169_v17  }
 0x10e   :  { %v166_v18 = vpop.f32.mrf.mxu3 }
 0x10f   :  { %281 = vrot.lane.b32.xlu0 %v166_v18, %s538_s5 }
 0x117   :  { %214 = vperm.xlu0 %514, %v169_v17  }
 0x11f   :  { %517 = vset.pattern.permute.xlu0 %v540_v38 }
 0x13f   :  { %180 = vxpose.xlu1.b32.start.end [1/1] (short) (narrow) %v166_v18, 8 }
 0x17c   :  { %v318_v20 = vpop.permute.xlu1 %317 }
 0x181   :  { %v282_v19 = vpop.permute.xlu0 %281 }
 0x182   :  { %284 = vxpose.xlu2.b32.start.end [1/1] (short) (narrow) %v282_v19, 8 }
 0x189   :  { %v215_v23 = vpop.permute.xlu0 %214 }
 0x192   :  { %516 = vset.pattern.permute.xlu1 %v540_v38 }
 0x1e3   :  { %v196_v21 = vpop.trf.xlu1 }
 0x1e4   :  { %v217_v22 = vperm.slane %v196_v21, 0  ;;  %518 = vset.pattern.permute.xlu2 %v540_v38 }
 0x1e6   :  { %v218_v24 = vadd.f32 %v217_v22, %v215_v23  ;;  %v393_v23 = vld [vmem:[%s697_s7 + $0x8] sm:$0xff] }
 0x1e7   :  { %475 = vmatpush.msrb.mxu3 %v393_v23 }
 0x1e8   :  { %vm219_vm3 = vcmp.ge.f32.partialorder %v218_v24, 0.0  ;;  %v220_v26 = vmul.f32 0.2, %v218_v24 }
 0x1ea   :  { %v221_v27 = vsel %vm219_vm3, %v218_v24, %v220_v26  ;;  %v392_v24 = vld [vmem:[%s697_s7] sm:$0xff] }
 0x1eb   :  { %v222_v28 = vsel %vm179_vm4, %v221_v27, -1e+30  ;;  %476 = vmatpush.msrb.mxu3 %v392_v24 }
 0x1ec   :  { %v224_v29 = vsel %vm172_vm5, %v222_v28, -inf }
 0x1f3   :  { %225 = vmax.xlane.f32.xlu2 %v224_v29 }
 0x21b   :  { %v300_v31 = vpop.trf.xlu2 }
 0x21c   :  { %v320_v32 = vperm.slane %v300_v31, 0  ;;  %v394_v31 = vld [vmem:[%s697_s7 + $0x10] sm:$0xff] }
 0x21d   :  { %453 = vmatpush.msrb.mxu1 %v394_v31 }
 0x21e   :  { %v321_v33 = vadd.f32 %v320_v32, %v318_v20  ;;  %v171_v32 = vld [vmem:[#allocation3] sm:$0xff] }
 0x220   :  { %vm322_vm7 = vcmp.ge.f32.partialorder %v321_v33, 0.0  ;;  %v323_v34 = vmul.f32 0.2, %v321_v33 }
 0x222   :  { %v324_v35 = vsel %vm322_vm7, %v321_v33, %v323_v34 }
 0x223   :  { %v325_v36 = vsel %vm179_vm4, %v324_v35, -1e+30 }
 0x224   :  { %v328_v37 = vsel %vm172_vm5, %v325_v36, -inf }
 0x225   :  { %329 = vmax.xlane.f32.xlu0 %v328_v37 }
 0x266   :  { %v226_v41 = vpop.xlane.xlu2 %225 }
 0x267   :  { %v227_v42 = vmax.f32 %v223_v40, %v226_v41 }
 0x269   :  { %v228_v43 = vsub.f32 %v223_v40, %v227_v42  ;;  %279 = vst.msk [vmem:[#allocation4] sm:$0xff] %vm98_vm6, %v227_v42  ;;  %233 = vperm.xlu1 %516, %v227_v42  }
 0x26b   :  { %v229_v61 = vmul.f32 1.442695, %v228_v43 }
 0x298   :  { %v330_v45 = vpop.xlane.xlu0 %329 }
 0x299   :  { %v331_v46 = vmax.f32 %v327_v44, %v330_v45 }
 0x29b   :  { %v332_v47 = vsub.f32 %v327_v44, %v331_v46  ;;  %387 = vst.msk [vmem:[#allocation4 + $0x8] sm:$0xff] %vm98_vm6, %v331_v46  ;;  %337 = vperm.xlu0 %517, %v331_v46  }
 0x29d   :  { %v333_v48 = vmul.f32 1.442695, %v332_v47 }
 0x29f   :  { %522 = vpow2.f32 %v333_v48 }
 0x2a3   :  { %359 = vrot.lane.b32.xlu0 %v625_v13, %s542_s2 }
 0x2a5   :  { %v523_v49 = vpop.eup %522 }
 0x2a6   :  { %355 = vperm.xlu1 %516, %v523_v49   ;;  %v345_v7 = vmul.f32 %v523_v49, %v344_v6 }
 0x2ae   :  { %430 = vrot.lane.b32.xlu1 %v521_v5, %s542_s2 }
 0x2db   :  { %v234_v50 = vpop.permute.xlu1 %233 }
 0x2dc   :  { %v236_v51 = vsub.f32 %v222_v28, %v234_v50 }
 0x2de   :  { %v237_v52 = vmul.f32 1.442695, %v236_v51 }
 0x2e0   :  { %524 = vpow2.f32 %v237_v52 }
 0x2e6   :  { %v525_v53 = vpop.eup %524 }
 0x2e7   :  { %503 = vmatmul.msk.f32.vlgmr.msrb.gmra.mxu0 %vm172_vm5, %v525_v53  ;;  %v241_v54 = vsel %vm172_vm5, %v525_v53, 0.0 }
 0x2e8   :  { %242 = vadd.xlane.f32.xlu0 %v241_v54 }
 0x30d   :  { %v338_v55 = vpop.permute.xlu0 %337 }
 0x30e   :  { %v340_v56 = vsub.f32 %v325_v36, %v338_v55 }
 0x310   :  { %v341_v57 = vmul.f32 1.442695, %v340_v56 }
 0x312   :  { %526 = vpow2.f32 %v341_v57 }
 0x313   :  { %528 = vpow2.f32 %v229_v61 }
 0x315   :  { %v360_v58 = vpop.permute.xlu0 %359 }
 0x316   :  { %380 = vmatpush.msrb.mxu2 %v360_v58 }
 0x318   :  { %v527_v59 = vpop.eup %526  ;;  %v356_v17 = vpop.permute.xlu1 %355 }
 0x319   :  { %504 = vmatmul.msk.f32.vlgmr.msrb.gmra.mxu2 %vm172_vm5, %v527_v59  ;;  %v346_v60 = vsel %vm172_vm5, %v527_v59, 0.0  ;;  %v529_v62 = vpop.eup %528  ;;  %v358_v19 = vmul.f32 %v356_v17, %v352_v16 }
 0x31a   :  { %347 = vadd.xlane.f32.xlu2 %v346_v60  ;;  %v240_v0 = vmul.f32 %v529_v62, %v239_v63 }
 0x320   :  { %v431_v37 = vpop.permute.xlu1 %430 }
 0x332   :  { %249 = vperm.xlu2 %518, %v529_v62  }
 0x35b   :  { %v243_v1 = vpop.xlane.xlu0 %242 }
 0x35c   :  { %v244_v2 = vadd.f32 %v243_v1, %v240_v0 }
 0x35e   :  { %245 = vst.msk [vmem:[#allocation5] sm:$0xff] %vm98_vm6, %v244_v2 }
 0x364   :  { %v273_v14 = vpop.f32.mrf.mxu0 }
 0x365   :  { %v407_v3 = vld [vmem:[#allocation5] sm:$0xff] }
 0x366   :  { %530 = vrcp.f32 %v407_v3 }
 0x36c   :  { %v531_v4 = vpop.eup %530 }
 0x36d   :  { %412 = vperm.xlu2 %518, %v531_v4  }
 0x38d   :  { %v348_v8 = vpop.xlane.xlu2 %347 }
 0x38e   :  { %v349_v9 = vadd.f32 %v348_v8, %v345_v7 }
 0x390   :  { %350 = vst.msk [vmem:[#allocation5 + $0x8] sm:$0xff] %vm98_vm6, %v349_v9 }
 0x395   :  { %v250_v12 = vpop.permute.xlu2 %249 }
 0x396   :  { %v252_v13 = vmul.f32 %v250_v12, %v246_v10  ;;  %174 = vadd.xlane.f32.xlu2 %v173_v11 }
 0x397   :  { %v421_v15 = vld [vmem:[#allocation5 + $0x8] sm:$0xff] }
 0x398   :  { %v276_v18 = vadd.f32 %v273_v14, %v252_v13  ;;  %532 = vrcp.f32 %v421_v15 }
 0x39a   :  { %278 = vst.msk [vmem:[#allocation6] sm:$0xff] %vm104_vm8, %v276_v18 }
 0x39c   :  { %v382_v20 = vpop.f32.mrf.mxu2 }
 0x39d   :  { %v385_v21 = vadd.f32 %v382_v20, %v358_v19 }
 0x39e   :  { %v533_v22 = vpop.eup %532 }
 0x39f   :  { %386 = vst.msk [vmem:[#allocation6 + $0x8] sm:$0xff] %vm104_vm8, %v385_v21  ;;  %426 = vperm.xlu0 %517, %v533_v22  }
 0x3a1   :  { %v409_v25 = vld [vmem:[#allocation6] sm:$0xff] }
 0x3a6   :  { %v423_v35 = vld [vmem:[#allocation6 + $0x8] sm:$0xff] }
 0x3c7   :  { %v413_v26 = vpop.permute.xlu2 %412 }
 0x3c8   :  { %v415_v27 = vmul.f32 %v413_v26, %v409_v25 }
 0x3ca   :  { %v419_v28 = vadd.f32 %v521_v5, %v415_v27 }
 0x3cc   :  { %v420_v29 = vmax.f32 %v419_v28, 0.0 }
 0x3ce   :  { %506 = vmatmul.msk.f32.vlgmr.msrb.gmra.mxu3 %vm104_vm8, %v420_v29 }
 0x409   :  { %v175_v33 = vpop.xlane.xlu2 %174 }
 0x40a   :  { %v176_v34 = vadd.f32 %v175_v33, %v171_v32 }
 0x40c   :  { %178 = vst.msk [vmem:[#allocation3] sm:$0xff] %vm98_vm6, %v176_v34 }
 0x411   :  { %v427_v36 = vpop.permute.xlu0 %426 }
 0x412   :  { %v429_v38 = vmul.f32 %v427_v36, %v423_v35 }
 0x413   :  { %v396_v39 = vld [vmem:[#allocation3] sm:$0xff] }
 0x414   :  { %v433_v40 = vadd.f32 %v431_v37, %v429_v38  ;;  %534 = vrsqrt.f32 %v396_v39  ;;  %vm403_vm10 = vweird.f32 %v396_v39 }
 0x416   :  { %v434_v41 = vmax.f32 %v433_v40, 0.0 }
 0x418   :  { %505 = vmatmul.msk.f32.vlgmr.msrb.gmra.mxu1 %vm104_vm8, %v434_v41 }
 0x41a   :  { %v535_v42 = vpop.eup %534 }
 0x41b   :  { %v398_v43 = vmul.f32 %v535_v42, %v396_v39  ;;  %vm404_vm9 = vweird.f32 %v535_v42 }
 0x41c   :  { %vm405_vm11 = vmor %vm403_vm10, %vm404_vm9 }
 0x41d   :  { %v399_v44 = vmul.f32 %v535_v42, %v398_v43 }
 0x41f   :  { %v400_v45 = vmul.f32 0.5, %v399_v44 }
 0x421   :  { %v401_v46 = vsub.f32 1.5, %v400_v45 }
 0x423   :  { %v402_v47 = vmul.f32 %v535_v42, %v401_v46 }
 0x425   :  { %v406_v48 = vsel %vm405_vm11, %v535_v42, %v402_v47 }
 0x426   :  { %488 = vst.msk [vmem:[%s698_s9] sm:$0xff] %vm98_vm6, %v406_v48  ;;  %483 = vperm.xlu1 %516, %v406_v48  }
 0x451   :  { %v478_v49 = vpop.f32.mrf.mxu3 }
 0x495   :  { %v455_v50 = vpop.f32.mrf.mxu1 }
 0x496   :  { %v479_v51 = vadd.f32 %v478_v49, %v455_v50 }
 0x498   :  { %v484_v52 = vpop.permute.xlu1 %483 }
 0x499   :  { %v486_v53 = vmul.f32 %v484_v52, %v479_v51 }
 0x49b   :  { %487 = vst.msk [vmem:[%s699_s8] sm:$0xff] %vm104_vm8, %v486_v53 }

</bundles_post_ra>
